<compile_context>
chip_gen: v7x
topology: tpu7x:2x2x1
jax: 0.10.0
libtpu: 0.0.40
codegen_flags: <defaults>
</compile_context>

<pallas_src>
import functools
import math

import jax
import jax.numpy as jnp
from jax import lax
from jax.experimental import pallas as pl
from jax.experimental.pallas import tpu as pltpu


def _round_up(x, m):
    return (x + m - 1) // m * m


def _vmem_capacity_bytes():
    try:
        return int(pltpu.get_tpu_info().vmem_capacity_bytes)
    except Exception:
        return 64 * 1024 * 1024  # conservative fallback (v7x per-core VMEM)


# ---------------------- fast path: VMEM table + one-hot MXU gather -------------
def _embedding_onehot_kernel(ids_ref, table_ref, o_ref, *, vocab_len, scale):
    """out = one_hot(ids) @ table * scale  -- table fully resident in VMEM."""
    ids = ids_ref[...]                                            # (TB, 1) int32
    tb = ids.shape[0]
    cols = lax.broadcasted_iota(jnp.int32, (tb, vocab_len), 1)    # (TB, V)
    onehot = (cols == ids).astype(table_ref.dtype)                # (TB, V)
    rows = jnp.dot(onehot, table_ref[...],
                   preferred_element_type=jnp.float32)            # (TB, F) on MXU
    o_ref[...] = (rows * scale).astype(o_ref.dtype)


# ---------------------- general path: HBM table + row-DMA gather ---------------
def _embedding_gather_kernel(ids_ref, table_ref, o_ref, rows_vmem, sem,
                             *, tokens_per_block, scale):
    """Gather a block of table rows from HBM, scale by sqrt(F), store.

    The block is split in two chunks so chunk-1's DMAs overlap chunk-0's
    scale + store.  One semaphore wait per chunk covers all of its row copies.
    """
    chunk = tokens_per_block // 2
    base = pl.program_id(0) * tokens_per_block

    def issue_chunk(c):
        off = c * chunk                                  # static (0 or chunk)

        def _grp(g, carry):
            t0 = pl.multiple_of(g * 8, 8)
            for u in range(8):                           # 8-way unrolled issue
                t = t0 + u
                row = ids_ref[base + off + t]            # SMEM scalar read
                pltpu.make_async_copy(
                    table_ref.at[pl.ds(row, 1)],         # (1, F) row in HBM
                    rows_vmem.at[pl.ds(off + t, 1)],     # (1, F) slot in VMEM
                    sem.at[c],
                ).start()
            return carry

        lax.fori_loop(0, chunk // 8, _grp, 0)

    def wait_chunk(c):
        # Single wait: the byte count of one (chunk, F) copy equals the sum of
        # the `chunk` identical (1, F) row copies signaled on sem[c].
        pltpu.make_async_copy(
            table_ref.at[pl.ds(0, chunk)],               # dummy src (sizes only)
            rows_vmem.at[pl.ds(c * chunk, chunk)],
            sem.at[c],
        ).wait()

    def store_chunk(c):
        off = c * chunk
        o_ref[pl.ds(off, chunk), :] = (
            rows_vmem[pl.ds(off, chunk), :] * scale).astype(o_ref.dtype)

    # Issue both chunks first (all SMEM id reads happen before any wait),
    # then overlap chunk-1's in-flight DMAs with chunk-0's scale + store.
    issue_chunk(0)
    issue_chunk(1)
    wait_chunk(0)
    store_chunk(0)
    wait_chunk(1)
    store_chunk(1)


# ------------------------------------ wrapper ----------------------------------
def embedding_pallas(ids, table, *, scale=None, max_block_tokens=1024,
                     onehot_max_vocab=2048, onehot_max_table_bytes=16 * 1024 * 1024,
                     force_gather=False):
    """out[..., :] = table[ids] * scale   (scale defaults to sqrt(feature_size))."""
    vocab_len, feature = table.shape
    if scale is None:
        scale = math.sqrt(feature)
    scale = float(scale)
    out_dtype = table.dtype

    orig_shape = ids.shape
    # Clamp so a bad id can never drive an out-of-bounds HBM DMA.
    # TODO(synk): PyTorch raises on out-of-range ids; here they are clamped.
    flat_ids = jnp.clip(ids.reshape(-1).astype(jnp.int32), 0, vocab_len - 1)
    n_tokens = flat_ids.shape[0]

    # Pad the feature axis to a multiple of 128 -> unmasked lane-dense stores.
    f_pad = _round_up(feature, 128)
    if f_pad != feature:
        table = jnp.pad(table, ((0, 0), (0, f_pad - feature)))

    itemsize = table.dtype.itemsize
    table_bytes = vocab_len * f_pad * itemsize

    # Generation-aware VMEM budget (v5e/v6e: 128 MiB phys -> 96 MiB limit;
    # v7x: 64 MiB phys -> 48 MiB limit via the conservative fallback).
    vmem_cap = _vmem_capacity_bytes()
    vmem_limit = min(int(vmem_cap * 3 // 4), 96 * 1024 * 1024)

    use_onehot = (vocab_len < 16) or (
        not force_gather
        and vocab_len <= onehot_max_vocab
        and table_bytes <= min(onehot_max_table_bytes, vmem_limit // 4))

    if use_onehot:
        # Per-token VMEM: double-buffered output + one-hot row + dot output row.
        budget = vmem_limit - table_bytes - (2 << 20)
        per_tok = 2 * f_pad * itemsize + 4 * vocab_len + 4 * f_pad
        tb = min(512, max(8, budget // max(per_tok, 1)))
        tb = max(8, (tb // 8) * 8)
        tb = min(tb, _round_up(n_tokens, 8))
        min_tile = 8
    else:
        # Per-token VMEM: (tb, F) gather scratch + double-buffered output block.
        budget = vmem_limit // 2
        per_tok = 3 * f_pad * itemsize
        tb = min(max_block_tokens, max(16, budget // max(per_tok, 1)))
        tb = max(16, (tb // 16) * 16)
        tb = min(tb, _round_up(n_tokens, 16))
        # The block-sized dummy wait slices the table, so keep tb <= vocab.
        tb = min(tb, max(16, (vocab_len // 16) * 16))
        min_tile = 16

    # Guarantee >= 2 grid steps when there is enough work (v7x megacore).
    if n_tokens >= 4 * min_tile and tb >= n_tokens:
        tb = max(min_tile, _round_up((n_tokens + 1) // 2, min_tile))

    n_pad = _round_up(n_tokens, tb)
    if n_pad != n_tokens:
        flat_ids = jnp.concatenate(
            [flat_ids, jnp.zeros((n_pad - n_tokens,), jnp.int32)])

    grid = (n_pad // tb,)
    compiler_params = pltpu.CompilerParams(
        dimension_semantics=("parallel",),       # independent token blocks
        vmem_limit_bytes=vmem_limit,
    )

    if use_onehot:
        kern = functools.partial(_embedding_onehot_kernel,
                                 vocab_len=vocab_len, scale=scale)
        out = pl.pallas_call(
            kern,
            out_shape=jax.ShapeDtypeStruct((n_pad, f_pad), out_dtype),
            grid=grid,
            in_specs=[
                pl.BlockSpec((tb, 1), lambda i: (i, 0)),             # ids block
                pl.BlockSpec((vocab_len, f_pad), lambda i: (0, 0)),  # whole table (VMEM-resident)
            ],
            out_specs=pl.BlockSpec((tb, f_pad), lambda i: (i, 0)),
            compiler_params=compiler_params,
        )(flat_ids.reshape(n_pad, 1), table)
    else:
        kern = functools.partial(_embedding_gather_kernel,
                                 tokens_per_block=tb, scale=scale)
        out = pl.pallas_call(
            kern,
            out_shape=jax.ShapeDtypeStruct((n_pad, f_pad), out_dtype),
            grid_spec=pltpu.PrefetchScalarGridSpec(
                num_scalar_prefetch=1,                         # token ids -> SMEM
                grid=grid,
                in_specs=[pl.BlockSpec(memory_space=pl.ANY)],  # table stays in HBM
                out_specs=pl.BlockSpec((tb, f_pad), lambda i, ids: (i, 0)),
                scratch_shapes=[
                    pltpu.VMEM((tb, f_pad), table.dtype),      # gathered rows (2 chunks)
                    pltpu.SemaphoreType.DMA((2,)),             # one DMA sem per chunk
                ],
            ),
            compiler_params=compiler_params,
        )(flat_ids, table)

    if (n_pad != n_tokens) or (f_pad != feature):
        out = out[:n_tokens, :feature]
    return out.reshape(*orig_shape, feature)


# ------------------------------- module wrapper ---------------------------------
class EmbeddingPallas:
    """Embedding lookup followed by multiplication with sqrt(feature_size)."""

    def __init__(self, vocab_len, feature_size, key=None):
        self.vocab_len = vocab_len
        self.feature_size = feature_size
        self.sqrt_feature_size = math.sqrt(feature_size)
        if key is None:
            key = jax.random.PRNGKey(0)
        # nn.Embedding default init: N(0, 1)
        self.weight = jax.random.normal(key, (vocab_len, feature_size), jnp.float32)

    def __call__(self, x):
        return embedding_pallas(x, self.weight, scale=self.sqrt_feature_size)


# ------------------------------------- main -------------------------------------
if __name__ == "__main__":
    key = jax.random.PRNGKey(0)
    k_ids, k_w = jax.random.split(key)

    vocab_len, feature_size = 32, 128
    B, S = 2, 8
    ids = jax.random.randint(k_ids, (B, S), 0, vocab_len, dtype=jnp.int32)

    emb = EmbeddingPallas(vocab_len, feature_size, key=k_w)

    # Pure-JAX reference.
    ref = emb.weight[ids] * emb.sqrt_feature_size

    # Fast path (VMEM-resident table, one-hot MXU gather).
    out = jax.block_until_ready(emb(ids))
    assert out.shape == (B, S, feature_size) and out.dtype == emb.weight.dtype
    assert jnp.allclose(out, ref, atol=1e-4, rtol=1e-5), "onehot path mismatch"

    # Also exercise the HBM row-gather path (used for large vocabularies).
    out_g = jax.block_until_ready(
        embedding_pallas(ids, emb.weight, scale=emb.sqrt_feature_size,
                         force_gather=True))
    assert out_g.shape == (B, S, feature_size)
    assert jnp.allclose(out_g, ref, atol=1e-4, rtol=1e-5), "gather path mismatch"

    print("KERNEL_OK")
</pallas_src>

<mosaic_0001>
module attributes {stable_mosaic.version = 11 : i64} {
  func.func @_embedding_onehot_kernel(%arg0: i32, %arg1: memref<16x1xi32, #tpu.memory_space<vmem>>, %arg2: memref<32x128xf32, #tpu.memory_space<vmem>>, %arg3: memref<16x128xf32, #tpu.memory_space<vmem>>) attributes {dimension_semantics = [#tpu.dimension_semantics<parallel>], iteration_bounds = array<i64: 1>, scalar_prefetch = 0 : i64, scratch_operands = 0 : i64, tpu.core_type = #tpu.core_type<tc>, window_params = [{transform_indices = @transform_0, window_bounds = array<i64: 16, 1>}, {pipeline_mode = #tpu.pipeline_mode<synchronous>, transform_indices = @transform_1, window_bounds = array<i64: 32, 128>}, {transform_indices = @transform_2, window_bounds = array<i64: 16, 128>}]} {
    %c0 = arith.constant 0 : index
    %c0_0 = arith.constant 0 : index
    %0 = vector.load %arg1[%c0, %c0_0] : memref<16x1xi32, #tpu.memory_space<vmem>>, vector<16x1xi32>
    %1 = tpu.iota {dimensions = array<i32: 1>} : vector<16x32xi32>
    %2 = vector.broadcast %0 : vector<16x1xi32> to vector<16x32xi32>
    %3 = arith.cmpi eq, %1, %2 : vector<16x32xi32>
    %4 = arith.extui %3 : vector<16x32xi1> to vector<16x32xi32>
    %5 = arith.sitofp %4 : vector<16x32xi32> to vector<16x32xf32>
    %c0_1 = arith.constant 0 : index
    %c0_2 = arith.constant 0 : index
    %6 = vector.load %arg2[%c0_1, %c0_2] : memref<32x128xf32, #tpu.memory_space<vmem>>, vector<32x128xf32>
    %cst = arith.constant dense<0.000000e+00> : vector<16x128xf32>
    %7 = tpu.matmul %5, %6, %cst {dimension_numbers = #tpu.dot_dimension_numbers<[1], [0], [0], [1], [0, 0, 1, 1], [], []>} : vector<16x32xf32>, vector<32x128xf32>, vector<16x128xf32> -> vector<16x128xf32>
    %cst_3 = arith.constant 11.3137083 : f32
    %8 = vector.broadcast %cst_3 : f32 to vector<16x128xf32>
    %9 = arith.mulf %7, %8 : vector<16x128xf32>
    %c0_4 = arith.constant 0 : index
    %c0_5 = arith.constant 0 : index
    %10 = vector.load %arg3[%c0_4, %c0_5] : memref<16x128xf32, #tpu.memory_space<vmem>>, vector<16x128xf32>
    tpu.vector_store %arg3[%c0_4, %c0_5], %9 {strides = array<i32>} : memref<16x128xf32, #tpu.memory_space<vmem>>, vector<16x128xf32>,
    return
  }
  func.func @transform_0(%arg0: i32) -> (i32, i32) {
    %c0_i32 = arith.constant 0 : i32
    %c0_i32_0 = arith.constant 0 : i32
    return %arg0, %c0_i32 : i32, i32
  }
  func.func @transform_1(%arg0: i32) -> (i32, i32) {
    %c0_i32 = arith.constant 0 : i32
    %c0_i32_0 = arith.constant 0 : i32
    %c0_i32_1 = arith.constant 0 : i32
    return %c0_i32, %c0_i32_0 : i32, i32
  }
  func.func @transform_2(%arg0: i32) -> (i32, i32) {
    %c0_i32 = arith.constant 0 : i32
    %c0_i32_0 = arith.constant 0 : i32
    return %arg0, %c0_i32 : i32, i32
  }
}

</mosaic_0001>

<bundles_post_ra>
// kernel: tpu_custom_call.1
= control target key start
LH: loop header
LB: loop body
LE: loop exit
PB: predicated region body
PF: predicated region fallthrough
CT: control target
= control target key end

     0   :  { %7 = vsyncpa [#allocation3], 0  ;;  %s290_s0 = inlined_call_operand.vmem [shape: s32[16,1], index: 0, kind: input, shape index: {}]   ;;  %s291_s1 = inlined_call_operand.hbm [shape: f32[32,128], index: 1, kind: input, shape index: {}]   ;;  %s292_s2 = inlined_call_operand.hbm [shape: f32[16,128], index: 2, kind: output, shape index: {}]  }
   0x1   :  { %8 = vsyncpa [#allocation4], 0  ;;  %s233_s9 = smov [#allocation2]   ;;  %s185_s13 = scalar_lea.hbm %s291_s1, 512 }
   0x2   :  { %s16_s10 = sshll.u32 %s233_s9, 4  ;;  %p186_p0 = scmp.ne.s32.totalorder %s291_s1, %s185_s13  ;;  %s17_s10 = int_to_ptr.vmem [resolvable:$true] %s16_s10 }
   0x3   :  { %p189_p1 = scmp.lt.u32.totalorder %s185_s13, %s291_s1 }
   0x5   :  { %p191_p2 = pnand %p189_p1, %p186_p0 }
   0x7   :  { %194 = shalt.err (!%p191_p2)
}
   0x8   :  { %s195_s18 = scalar_lea.vmem %s17_s10, 512  ;;  %p200_p4 = scmp.lt.s32.totalorder %s17_s10, %s17_s10 }
   0x9   :  { %p196_p3 = scmp.ne.s32.totalorder %s17_s10, %s195_s18  ;;  %p201_p5 = scmp.lt.s32.totalorder %s195_s18, %s195_s18 }
   0xb   :  { %p202_p6 = por %p201_p5, %p200_p4 }
   0xd   :  { %p203_p7 = pnand %p202_p6, %p196_p3 }
   0xf   :  { %206 = shalt.err (!%p203_p7)
}
  0x10   :  { %s234_s19 = smov 128   ;;  %s235_s20 = smov 8  }
  0x11   :  { %22 = dma.hbm_to_vmem [thread:$0]  %s291_s1, 512, %s17_s10, [#allocation3], %s234_s19, %s234_s19, %s235_s20  }
  0x12   :  { %229 = dma.done.wait [#allocation3], 512  }
  0x13   :  { %230 = vsyncadd [#allocation3], 4294966784  ;;  %v236_v0 = vmov 0   ;;  %v26_v1 = vld [vmem:[%s290_s0] sm:$0xff]  ;;  %v43_v3 = vld [vmem:[#allocation2 + $0x8] sm:$0xff]  ;;  %v28_v9 = vlaneseq  ;;  %vm46_vm0 = vcmask 261120  }
  0x14   :  { %184 = vset.pattern.permute.xlu0 %v236_v0  ;;  %v42_v2 = vld [vmem:[#allocation2] sm:$0xff]  ;;  %v44_v4 = vld [vmem:[#allocation2 + $0x10] sm:$0xff]  ;;  %v45_v5 = vld [vmem:[#allocation2 + $0x18] sm:$0xff]  ;;  %v237_v12 = vmov 0.0  }
  0x15   :  { %31 = vperm.xlu0 %184, %v26_v1   ;;  %v27_v6 = vld [vmem:[%s290_s0 + $0x8] sm:$0xff]  ;;  %v170_v7 = vpack.c.bf16 %v43_v3, %v42_v2  ;;  %v174_v8 = vpack.c.bf16 %v45_v5, %v44_v4  ;;  %v29_v10 = vand.u32 127, %v28_v9  ;;  %s238_s0 = smov [#allocation5]  }
  0x16   :  { %s137_s1 = sshll.u32 %s238_s0, 4  ;;  %s138_s1 = int_to_ptr.vmem [resolvable:$true] %s137_s1 }
  0x17   :  { %171 = vmatprep.subr.bf16.mxu0 %v170_v7  ;;  %s207_s27 = scalar_lea.vmem %s138_s1, 256  ;;  %p212_p9 = scmp.lt.s32.totalorder %s138_s1, %s138_s1 }
  0x18   :  { %173 = vmatpush3.bf16.msra.mxu0 %v170_v7  ;;  %p208_p8 = scmp.ne.s32.totalorder %s138_s1, %s207_s27  ;;  %p213_p10 = scmp.lt.s32.totalorder %s207_s27, %s207_s27 }
  0x19   :  { %34 = vperm.xlu0 %184, %v27_v6   ;;  %175 = vmatprep.subr.bf16.mxu0 %v174_v8 }
  0x1a   :  { %p214_p11 = por %p213_p10, %p212_p9 }
  0x1c   :  { %177 = vmatpush3.bf16.msra.mxu0 %v174_v8  ;;  %p215_p12 = pnand %p214_p11, %p208_p8 }
  0x94   :  { %v32_v11 = vpop.permute.xlu0 %31 }
  0x95   :  { %vm36_vm1 = vcmp.eq.s32.totalorder %v29_v10, %v32_v11 }
  0x96   :  { %v149_v13 = vsel %vm36_vm1, 1.0, %v237_v12 }
  0x97   :  { %167 = vmatprep.mubr.msk.f32.mxu0 %vm46_vm0, %v149_v13 }
  0x98   :  { %v35_v14 = vpop.permute.xlu0 %34 }
  0x99   :  { %vm37_vm2 = vcmp.eq.s32.totalorder %v29_v10, %v35_v14 }
  0x9a   :  { %v150_v15 = vsel %vm37_vm2, 1.0, %v237_v12 }
  0x9b   :  { %168 = vmatmul.mubr.msk.f32.vlgmr.msra.gmra.mrb[0].mxu0 %vm46_vm0, %v150_v15 }
 0x16e   :  { %v169_v16 = vpop.f32.mrb[0].mxu0 }
 0x16f   :  { %v129_v17 = vmul.f32 11.313708, %v169_v16  ;;  %v119_v18 = vpop.f32.mrb[1].mxu0 }
 0x170   :  { %v128_v19 = vmul.f32 11.313708, %v119_v18 }
 0x171   :  { %131 = vst [vmem:[#allocation5 + $0x8] sm:$0xff] %v129_v17 }
 0x172   :  { %130 = vst [vmem:[#allocation5] sm:$0xff] %v128_v19 }
 0x173   :  { %218 = shalt.err (!%p215_p12)
}
 0x174   :  { %s219_s30 = scalar_lea.hbm %s292_s2, 256 }
 0x175   :  { %p220_p13 = scmp.ne.s32.totalorder %s292_s2, %s219_s30  ;;  %p223_p0 = scmp.lt.u32.totalorder %s219_s30, %s292_s2 }
 0x177   :  { %p225_p1 = pnand %p223_p0, %p220_p13 }
 0x179   :  { %228 = shalt.err (!%p225_p1)
}
 0x17a   :  { %143 = dma.vmem_to_hbm [thread:$0]  %s138_s1, 256, %s292_s2, [#allocation4], %s234_s19, %s234_s19, %s235_s20  }
 0x17b   :  { %231 = dma.done.wait [#allocation4], 256  }
 0x17c   :  { %232 = vsyncadd [#allocation4], 4294967040 }
 0x17d   :  { %147 = vsyncpa [#allocation3], 1 }
 0x17e   :  { %148 = vsyncpa [#allocation4], 1 }

</bundles_post_ra>
